<compile_context>
chip_gen: v7x
topology: tpu7x:2x2x1
jax: 0.10.0
libtpu: 0.0.40
codegen_flags: <defaults>
</compile_context>

<pallas_src>
import functools

import jax
import jax.numpy as jnp
import numpy as np
from jax.experimental import pallas as pl
from jax.experimental.pallas import tpu as pltpu


# ----------------------------- Pallas kernel ---------------------------------
def _single_task_kernel(
    x_ref, xt_ref, adj_ref, segn_ref, segt_ref,
    w_gat_ref, ws_dst_ref, ws_srcT_ref,
    vecs_ref, an_w1_ref, an_w2_ref, fc_w_ref, out_w_ref, bias_ref,
    out_ref, alpha_ref,
):
    x = x_ref[...]              # [N, F]
    x_t = xt_ref[...]           # [F, N]
    adj = adj_ref[...]          # [N, N]   adj[i, j] = 1 if edge j -> i
    seg_n = segn_ref[...]       # [G, N]   seg / counts
    seg_t = segt_ref[...]       # [N, G]

    N, F = x_ref.shape
    H = ws_dst_ref.shape[1]
    AH = an_w1_ref.shape[1]     # attention_net hidden (16)
    OD = fc_w_ref.shape[1]      # output_dim
    NEG = jnp.float32(-1e30)

    mask = adj > 0.0            # hoisted, reused across heads

    # ---------------- packed small parameters ---------------------------------
    vecs = vecs_ref[...]                            # [4, HF]
    b_gat = vecs[0:1, :]
    gn_w = vecs[1:2, :]
    gn_b = vecs[2:3, :]
    gn_ms = vecs[3:4, :]
    bias = bias_ref[...]                            # [1, AH+1+OD+1]
    an_b1 = bias[:, 0:AH]
    an_b2 = bias[:, AH:AH + 1]
    fc_b = bias[:, AH + 1:AH + 1 + OD]
    out_b = bias[:, AH + 1 + OD:AH + 2 + OD]

    # ---------------- GATConv (shared src/dst linear, heads concatenated) -----
    # Three independent matmuls off x (attention projection folded on host):
    xw = jnp.dot(x, w_gat_ref[...], preferred_element_type=jnp.float32)          # [N, H*F]
    s_dst = jnp.dot(x, ws_dst_ref[...], preferred_element_type=jnp.float32)      # [N, H]
    s_srcT = jnp.dot(ws_srcT_ref[...], x_t, preferred_element_type=jnp.float32)  # [H, N]

    head_outs = []
    for h in range(H):                                # static unroll over heads
        # logits[i, j] = leaky_relu(alpha_src[j] + alpha_dst[i], 0.2)
        logits = s_dst[:, h:h + 1] + s_srcT[h:h + 1, :]                           # [N, N]
        logits = jnp.where(logits > 0, logits, 0.2 * logits)
        masked = jnp.where(mask, logits, NEG)
        m = jnp.max(masked, axis=-1, keepdims=True)
        # masked entries are -1e30 -> exp underflows to exactly 0 (self loops
        # guarantee every row has a real max), no second select needed.
        p = jnp.exp(masked - m)
        s = jnp.maximum(jnp.sum(p, axis=-1, keepdims=True), 1e-30)
        alpha = p / s                                                             # [N, N]
        alpha_ref[h] = alpha                          # full [N, N] block store per head
        head_outs.append(
            jnp.dot(alpha, xw[:, h * F:(h + 1) * F],
                    preferred_element_type=jnp.float32))                          # [N, F]

    x2 = jnp.concatenate(head_outs, axis=-1) + b_gat                              # [N, HF]

    # ---------------- GraphNorm (seg-based reductions, no dense P) ------------
    mg = jnp.dot(seg_n, x2, preferred_element_type=jnp.float32)                   # [G, HF]
    mean_n = jnp.dot(seg_t, mg, preferred_element_type=jnp.float32)               # [N, HF]
    xc = x2 - mean_n * gn_ms
    vg = jnp.dot(seg_n, xc * xc, preferred_element_type=jnp.float32)              # [G, HF]
    var_n = jnp.dot(seg_t, vg, preferred_element_type=jnp.float32)                # [N, HF]
    xn = gn_w * xc * jax.lax.rsqrt(var_n + 1e-5) + gn_b

    # ReLU + node_dropout (identity in eval)
    xn = jnp.maximum(xn, 0.0)

    # ---------------- GlobalAttention pooling ---------------------------------
    g1 = jnp.maximum(
        jnp.dot(xn, an_w1_ref[...], preferred_element_type=jnp.float32) + an_b1,
        0.0)                                                                      # [N, AH]
    gate = jax.nn.sigmoid(
        jnp.dot(g1, an_w2_ref[...], preferred_element_type=jnp.float32) + an_b2)  # [N, 1]
    # TODO(synk): at large N produce the gate in row orientation to avoid this relayout.
    gate_row = jnp.broadcast_to(jnp.transpose(gate), seg_n.shape)                 # [G, N]
    smask = seg_n > 0.0
    gmask = jnp.where(smask, gate_row, NEG)
    gm = jnp.max(gmask, axis=-1, keepdims=True)
    ge = jnp.exp(gmask - gm)                          # masked -> exact 0 after max-subtract
    denom = jnp.maximum(jnp.sum(ge, axis=-1, keepdims=True), 1e-30)
    attn = ge / denom                                                             # [G, N]
    pooled = jnp.dot(attn, xn, preferred_element_type=jnp.float32)                # [G, HF]

    # ---------------- fc_g1 -> ReLU -> (dropout) -> out -> sigmoid ------------
    y = jnp.maximum(
        jnp.dot(pooled, fc_w_ref[...], preferred_element_type=jnp.float32) + fc_b,
        0.0)
    out_ref[...] = jax.nn.sigmoid(
        jnp.dot(y, out_w_ref[...], preferred_element_type=jnp.float32) + out_b)   # [G, 1]


# ----------------------------- host-side edge prep ----------------------------
def add_self_loops_host(edge_index, num_nodes):
    """Remove existing self loops, append one loop per node (static shapes, host numpy)."""
    ei = np.asarray(edge_index)
    keep = ei[0] != ei[1]
    src = ei[0][keep]
    dst = ei[1][keep]
    loop = np.arange(num_nodes, dtype=ei.dtype)
    return np.stack([np.concatenate([src, loop]),
                     np.concatenate([dst, loop])], axis=0)


# ----------------------------- JAX wrapper ------------------------------------
@functools.partial(jax.jit, static_argnames=("num_graphs",))
def single_task_forward(x, edge_index_sl, batch, params, *, num_graphs):
    """Returns (out [G,1], (edge_index_with_self_loops [2,E'], alpha [E', H]))."""
    N, F = x.shape
    H = params["att_src"].shape[0]
    G = num_graphs
    AH = params["an_w1"].shape[1]
    OD = params["fc_w"].shape[1]

    src_sl, dst_sl = edge_index_sl[0], edge_index_sl[1]

    # dense adjacency: adj[dst, src] = 1 (self loops already in edge_index_sl)
    adj = jnp.zeros((N, N), jnp.float32).at[dst_sl, src_sl].set(1.0)
    # one-hot graph assignment and per-graph mean operators (no dense [N,N] P)
    seg = (batch[None, :] == jnp.arange(G, dtype=batch.dtype)[:, None]).astype(jnp.float32)
    counts = jnp.maximum(jnp.sum(seg, axis=1, keepdims=True), 1.0)                # [G, 1]
    seg_norm = seg / counts                                                       # [G, N]
    seg_t = jnp.transpose(seg)                                                    # [N, G]

    # fold attention vectors through the GAT linear (host side):
    # scores_dst = x @ ws_dst, scores_src^T = ws_src^T @ x^T
    w3 = params["w_gat"].reshape(F, H, F)
    ws_dst = jnp.einsum("fhc,hc->fh", w3, params["att_dst"])                      # [F, H]
    ws_srcT = jnp.transpose(jnp.einsum("fhc,hc->fh", w3, params["att_src"]))      # [H, F]

    # pack tiny parameter tensors to cut DMA descriptor count
    vecs = jnp.concatenate(
        [params["b_gat"], params["gn_w"], params["gn_b"], params["gn_ms"]], axis=0)   # [4, HF]
    bias_pack = jnp.concatenate(
        [params["an_b1"], params["an_b2"], params["fc_b"], params["out_b"]], axis=1)  # [1, AH+1+OD+1]

    vmem = pl.BlockSpec(memory_space=pltpu.MemorySpace.VMEM)
    inputs = (
        x, jnp.transpose(x), adj, seg_norm, seg_t,
        params["w_gat"], ws_dst, ws_srcT,
        vecs, params["an_w1"], params["an_w2"], params["fc_w"], params["out_w"], bias_pack,
    )

    out, alpha_slab = pl.pallas_call(
        _single_task_kernel,
        out_shape=(
            jax.ShapeDtypeStruct((G, 1), jnp.float32),
            jax.ShapeDtypeStruct((H, N, N), jnp.float32),   # heads stacked along rows
        ),
        in_specs=[vmem] * len(inputs),
        out_specs=(vmem, vmem),
        compiler_params=pltpu.CompilerParams(vmem_limit_bytes=32 * 1024 * 1024),
    )(*inputs)

    # gather per-edge attention weights: alpha_slab[h, dst, src] -> [E', H]
    alpha_edges = jnp.transpose(alpha_slab[:, dst_sl, src_sl])
    return out, (edge_index_sl, alpha_edges)


# ----------------------------- setup / main -----------------------------------
def init_params(key, num_features, n_heads, output_dim):
    F, H = num_features, n_heads
    HF = F * H
    ks = jax.random.split(key, 10)
    n = lambda k, shape, s=0.1: (jax.random.normal(k, shape, jnp.float32) * s)
    return {
        # GATConv: lin (bias=False), att_src/att_dst [H, F], bias [HF]
        "w_gat": n(ks[0], (F, HF)),
        "att_src": n(ks[1], (H, F)),
        "att_dst": n(ks[2], (H, F)),
        "b_gat": n(ks[3], (1, HF), 0.01),
        # GraphNorm (PyG defaults: weight=1, bias=0, mean_scale=1)
        "gn_w": jnp.ones((1, HF), jnp.float32),
        "gn_b": jnp.zeros((1, HF), jnp.float32),
        "gn_ms": jnp.ones((1, HF), jnp.float32),
        # attention_net: Linear(HF,16) -> ReLU -> Linear(16,1) -> Sigmoid
        "an_w1": n(ks[4], (HF, 16)),
        "an_b1": jnp.zeros((1, 16), jnp.float32),
        "an_w2": n(ks[5], (16, 1)),
        "an_b2": jnp.zeros((1, 1), jnp.float32),
        # fc_g1: Linear(HF, output_dim)
        "fc_w": n(ks[6], (HF, output_dim)),
        "fc_b": jnp.zeros((1, output_dim), jnp.float32),
        # out: Linear(output_dim, 1)
        "out_w": n(ks[7], (output_dim, 1)),
        "out_b": jnp.zeros((1, 1), jnp.float32),
    }


if __name__ == "__main__":
    num_features = 8     # F
    n_heads1 = 2         # H
    output_dim = 16
    N = 16               # nodes total
    G = 2                # graphs (8 nodes each)

    key = jax.random.PRNGKey(0)
    kx, kp = jax.random.split(key)

    x = jax.random.normal(kx, (N, num_features), jnp.float32)
    batch = jnp.array([0] * 8 + [1] * 8, dtype=jnp.int32)

    # deterministic ring edges (both directions) within each graph, no self loops
    src_list, dst_list = [], []
    for base in (0, 8):
        for k in range(8):
            a, b = base + k, base + (k + 1) % 8
            src_list += [a, b]
            dst_list += [b, a]
    edge_index = np.stack([src_list, dst_list]).astype(np.int32)              # [2, 32]

    # self-loop augmentation done on host so all traced shapes are static (jit-friendly)
    edge_index_sl = jnp.asarray(add_self_loops_host(edge_index, N))           # [2, 48]

    params = init_params(kp, num_features, n_heads1, output_dim)

    out, (ei, w) = single_task_forward(x, edge_index_sl, batch, params, num_graphs=G)
    jax.block_until_ready((out, ei, w))

    assert out.shape == (G, 1)
    assert ei.shape[0] == 2 and w.shape == (ei.shape[1], n_heads1)
    assert bool(jnp.all(jnp.isfinite(out))) and bool(jnp.all(jnp.isfinite(w)))
    print("KERNEL_OK")
</pallas_src>

<mosaic_0001>
module attributes {stable_mosaic.version = 11 : i64} {
  func.func @_single_task_kernel(%arg0: memref<16x8xf32, #tpu.memory_space<vmem>>, %arg1: memref<8x16xf32, #tpu.memory_space<vmem>>, %arg2: memref<16x16xf32, #tpu.memory_space<vmem>>, %arg3: memref<2x16xf32, #tpu.memory_space<vmem>>, %arg4: memref<16x2xf32, #tpu.memory_space<vmem>>, %arg5: memref<8x16xf32, #tpu.memory_space<vmem>>, %arg6: memref<8x2xf32, #tpu.memory_space<vmem>>, %arg7: memref<2x8xf32, #tpu.memory_space<vmem>>, %arg8: memref<4x16xf32, #tpu.memory_space<vmem>>, %arg9: memref<16x16xf32, #tpu.memory_space<vmem>>, %arg10: memref<16x1xf32, #tpu.memory_space<vmem>>, %arg11: memref<16x16xf32, #tpu.memory_space<vmem>>, %arg12: memref<16x1xf32, #tpu.memory_space<vmem>>, %arg13: memref<1x34xf32, #tpu.memory_space<vmem>>, %arg14: memref<2x1xf32, #tpu.memory_space<vmem>>, %arg15: memref<2x16x16xf32, #tpu.memory_space<vmem>>) attributes {dimension_semantics = [], scalar_prefetch = 0 : i64, scratch_operands = 0 : i64, tpu.core_type = #tpu.core_type<tc>} {
    %c0 = arith.constant 0 : index
    %c0_0 = arith.constant 0 : index
    %0 = vector.load %arg0[%c0, %c0_0] : memref<16x8xf32, #tpu.memory_space<vmem>>, vector<16x8xf32>
    %c0_1 = arith.constant 0 : index
    %c0_2 = arith.constant 0 : index
    %1 = vector.load %arg1[%c0_1, %c0_2] : memref<8x16xf32, #tpu.memory_space<vmem>>, vector<8x16xf32>
    %c0_3 = arith.constant 0 : index
    %c0_4 = arith.constant 0 : index
    %2 = vector.load %arg2[%c0_3, %c0_4] : memref<16x16xf32, #tpu.memory_space<vmem>>, vector<16x16xf32>
    %c0_5 = arith.constant 0 : index
    %c0_6 = arith.constant 0 : index
    %3 = vector.load %arg3[%c0_5, %c0_6] : memref<2x16xf32, #tpu.memory_space<vmem>>, vector<2x16xf32>
    %c0_7 = arith.constant 0 : index
    %c0_8 = arith.constant 0 : index
    %4 = vector.load %arg4[%c0_7, %c0_8] : memref<16x2xf32, #tpu.memory_space<vmem>>, vector<16x2xf32>
    %cst = arith.constant 0.000000e+00 : f32
    %5 = vector.broadcast %cst : f32 to vector<16x16xf32>
    %6 = arith.cmpf ogt, %2, %5 : vector<16x16xf32>
    %c0_9 = arith.constant 0 : index
    %c0_10 = arith.constant 0 : index
    %7 = vector.load %arg8[%c0_9, %c0_10] : memref<4x16xf32, #tpu.memory_space<vmem>>, vector<4x16xf32>
    %8 = vector.extract_strided_slice %7 {offsets = [0, 0], sizes = [1, 16], strides = [1, 1]} : vector<4x16xf32> to vector<1x16xf32>
    %9 = vector.extract_strided_slice %7 {offsets = [1, 0], sizes = [1, 16], strides = [1, 1]} : vector<4x16xf32> to vector<1x16xf32>
    %10 = vector.extract_strided_slice %7 {offsets = [2, 0], sizes = [1, 16], strides = [1, 1]} : vector<4x16xf32> to vector<1x16xf32>
    %11 = vector.extract_strided_slice %7 {offsets = [3, 0], sizes = [1, 16], strides = [1, 1]} : vector<4x16xf32> to vector<1x16xf32>
    %c0_11 = arith.constant 0 : index
    %c0_12 = arith.constant 0 : index
    %12 = vector.load %arg13[%c0_11, %c0_12] : memref<1x34xf32, #tpu.memory_space<vmem>>, vector<1x34xf32>
    %13 = vector.extract_strided_slice %12 {offsets = [0, 0], sizes = [1, 16], strides = [1, 1]} : vector<1x34xf32> to vector<1x16xf32>
    %14 = vector.extract_strided_slice %12 {offsets = [0, 16], sizes = [1, 1], strides = [1, 1]} : vector<1x34xf32> to vector<1x1xf32>
    %15 = vector.extract_strided_slice %12 {offsets = [0, 17], sizes = [1, 16], strides = [1, 1]} : vector<1x34xf32> to vector<1x16xf32>
    %16 = vector.extract_strided_slice %12 {offsets = [0, 33], sizes = [1, 1], strides = [1, 1]} : vector<1x34xf32> to vector<1x1xf32>
    %c0_13 = arith.constant 0 : index
    %c0_14 = arith.constant 0 : index
    %17 = vector.load %arg5[%c0_13, %c0_14] : memref<8x16xf32, #tpu.memory_space<vmem>>, vector<8x16xf32>
    %cst_15 = arith.constant dense<0.000000e+00> : vector<16x16xf32>
    %18 = tpu.matmul %0, %17, %cst_15 {dimension_numbers = #tpu.dot_dimension_numbers<[1], [0], [0], [1], [0, 0, 1, 1], [], []>} : vector<16x8xf32>, vector<8x16xf32>, vector<16x16xf32> -> vector<16x16xf32>
    %c0_16 = arith.constant 0 : index
    %c0_17 = arith.constant 0 : index
    %19 = vector.load %arg6[%c0_16, %c0_17] : memref<8x2xf32, #tpu.memory_space<vmem>>, vector<8x2xf32>
    %cst_18 = arith.constant dense<0.000000e+00> : vector<16x2xf32>
    %20 = tpu.matmul %0, %19, %cst_18 {dimension_numbers = #tpu.dot_dimension_numbers<[1], [0], [0], [1], [0, 0, 1, 1], [], []>} : vector<16x8xf32>, vector<8x2xf32>, vector<16x2xf32> -> vector<16x2xf32>
    %c0_19 = arith.constant 0 : index
    %c0_20 = arith.constant 0 : index
    %21 = vector.load %arg7[%c0_19, %c0_20] : memref<2x8xf32, #tpu.memory_space<vmem>>, vector<2x8xf32>
    %cst_21 = arith.constant dense<0.000000e+00> : vector<2x16xf32>
    %22 = tpu.matmul %21, %1, %cst_21 {dimension_numbers = #tpu.dot_dimension_numbers<[1], [0], [0], [1], [0, 0, 1, 1], [], []>} : vector<2x8xf32>, vector<8x16xf32>, vector<2x16xf32> -> vector<2x16xf32>
    %23 = vector.extract_strided_slice %20 {offsets = [0, 0], sizes = [16, 1], strides = [1, 1]} : vector<16x2xf32> to vector<16x1xf32>
    %24 = vector.extract_strided_slice %22 {offsets = [0, 0], sizes = [1, 16], strides = [1, 1]} : vector<2x16xf32> to vector<1x16xf32>
    %25 = vector.broadcast %23 : vector<16x1xf32> to vector<16x16xf32>
    %26 = vector.broadcast %24 : vector<1x16xf32> to vector<16x16xf32>
    %27 = arith.addf %25, %26 : vector<16x16xf32>
    %cst_22 = arith.constant 0.000000e+00 : f32
    %28 = vector.broadcast %cst_22 : f32 to vector<16x16xf32>
    %29 = arith.cmpf ogt, %27, %28 : vector<16x16xf32>
    %cst_23 = arith.constant 2.000000e-01 : f32
    %30 = vector.broadcast %cst_23 : f32 to vector<16x16xf32>
    %31 = arith.mulf %30, %27 : vector<16x16xf32>
    %32 = arith.select %29, %27, %31 : vector<16x16xi1>, vector<16x16xf32>
    %cst_24 = arith.constant -1.000000e+30 : f32
    %33 = vector.broadcast %cst_24 : f32 to vector<16x16xf32>
    %34 = arith.select %6, %32, %33 : vector<16x16xi1>, vector<16x16xf32>
    %cst_25 = arith.constant dense<0xFF800000> : vector<16xf32>
    %35 = vector.multi_reduction <maximumf>, %34, %cst_25 [1] : vector<16x16xf32> to vector<16xf32>
    %36 = vector.shape_cast %35 : vector<16xf32> to vector<16x1xf32>
    %37 = vector.broadcast %36 : vector<16x1xf32> to vector<16x16xf32>
    %38 = arith.subf %34, %37 : vector<16x16xf32>
    %39 = math.exp %38 : vector<16x16xf32>
    %cst_26 = arith.constant dense<0.000000e+00> : vector<16xf32>
    %40 = vector.multi_reduction <add>, %39, %cst_26 [1] : vector<16x16xf32> to vector<16xf32>
    %41 = vector.shape_cast %40 : vector<16xf32> to vector<16x1xf32>
    %cst_27 = arith.constant 1.000000e-30 : f32
    %42 = vector.broadcast %cst_27 : f32 to vector<16x1xf32>
    %43 = arith.maximumf %41, %42 : vector<16x1xf32>
    %44 = vector.broadcast %43 : vector<16x1xf32> to vector<16x16xf32>
    %45 = arith.divf %39, %44 : vector<16x16xf32>
    %c0_28 = arith.constant 0 : index
    %c0_29 = arith.constant 0 : index
    %c0_30 = arith.constant 0 : index
    %46 = vector.load %arg15[%c0_28, %c0_29, %c0_30] : memref<2x16x16xf32, #tpu.memory_space<vmem>>, vector<1x16x16xf32>
    %47 = vector.shape_cast %46 : vector<1x16x16xf32> to vector<16x16xf32>
    %48 = vector.shape_cast %45 : vector<16x16xf32> to vector<1x16x16xf32>
    tpu.vector_store %arg15[%c0_28, %c0_29, %c0_30], %48 {strides = array<i32>} : memref<2x16x16xf32, #tpu.memory_space<vmem>>, vector<1x16x16xf32>,
    %49 = vector.extract_strided_slice %18 {offsets = [0, 0], sizes = [16, 8], strides = [1, 1]} : vector<16x16xf32> to vector<16x8xf32>
    %cst_31 = arith.constant dense<0.000000e+00> : vector<16x8xf32>
    %50 = tpu.matmul %45, %49, %cst_31 {dimension_numbers = #tpu.dot_dimension_numbers<[1], [0], [0], [1], [0, 0, 1, 1], [], []>} : vector<16x16xf32>, vector<16x8xf32>, vector<16x8xf32> -> vector<16x8xf32>
    %51 = vector.extract_strided_slice %20 {offsets = [0, 1], sizes = [16, 1], strides = [1, 1]} : vector<16x2xf32> to vector<16x1xf32>
    %52 = vector.extract_strided_slice %22 {offsets = [1, 0], sizes = [1, 16], strides = [1, 1]} : vector<2x16xf32> to vector<1x16xf32>
    %53 = vector.broadcast %51 : vector<16x1xf32> to vector<16x16xf32>
    %54 = vector.broadcast %52 : vector<1x16xf32> to vector<16x16xf32>
    %55 = arith.addf %53, %54 : vector<16x16xf32>
    %cst_32 = arith.constant 0.000000e+00 : f32
    %56 = vector.broadcast %cst_32 : f32 to vector<16x16xf32>
    %57 = arith.cmpf ogt, %55, %56 : vector<16x16xf32>
    %cst_33 = arith.constant 2.000000e-01 : f32
    %58 = vector.broadcast %cst_33 : f32 to vector<16x16xf32>
    %59 = arith.mulf %58, %55 : vector<16x16xf32>
    %60 = arith.select %57, %55, %59 : vector<16x16xi1>, vector<16x16xf32>
    %cst_34 = arith.constant -1.000000e+30 : f32
    %61 = vector.broadcast %cst_34 : f32 to vector<16x16xf32>
    %62 = arith.select %6, %60, %61 : vector<16x16xi1>, vector<16x16xf32>
    %cst_35 = arith.constant dense<0xFF800000> : vector<16xf32>
    %63 = vector.multi_reduction <maximumf>, %62, %cst_35 [1] : vector<16x16xf32> to vector<16xf32>
    %64 = vector.shape_cast %63 : vector<16xf32> to vector<16x1xf32>
    %65 = vector.broadcast %64 : vector<16x1xf32> to vector<16x16xf32>
    %66 = arith.subf %62, %65 : vector<16x16xf32>
    %67 = math.exp %66 : vector<16x16xf32>
    %cst_36 = arith.constant dense<0.000000e+00> : vector<16xf32>
    %68 = vector.multi_reduction <add>, %67, %cst_36 [1] : vector<16x16xf32> to vector<16xf32>
    %69 = vector.shape_cast %68 : vector<16xf32> to vector<16x1xf32>
    %cst_37 = arith.constant 1.000000e-30 : f32
    %70 = vector.broadcast %cst_37 : f32 to vector<16x1xf32>
    %71 = arith.maximumf %69, %70 : vector<16x1xf32>
    %72 = vector.broadcast %71 : vector<16x1xf32> to vector<16x16xf32>
    %73 = arith.divf %67, %72 : vector<16x16xf32>
    %c1 = arith.constant 1 : index
    %c0_38 = arith.constant 0 : index
    %c0_39 = arith.constant 0 : index
    %74 = vector.load %arg15[%c1, %c0_38, %c0_39] : memref<2x16x16xf32, #tpu.memory_space<vmem>>, vector<1x16x16xf32>
    %75 = vector.shape_cast %74 : vector<1x16x16xf32> to vector<16x16xf32>
    %76 = vector.shape_cast %73 : vector<16x16xf32> to vector<1x16x16xf32>
    tpu.vector_store %arg15[%c1, %c0_38, %c0_39], %76 {strides = array<i32>} : memref<2x16x16xf32, #tpu.memory_space<vmem>>, vector<1x16x16xf32>,
    %77 = vector.extract_strided_slice %18 {offsets = [0, 8], sizes = [16, 8], strides = [1, 1]} : vector<16x16xf32> to vector<16x8xf32>
    %cst_40 = arith.constant dense<0.000000e+00> : vector<16x8xf32>
    %78 = tpu.matmul %73, %77, %cst_40 {dimension_numbers = #tpu.dot_dimension_numbers<[1], [0], [0], [1], [0, 0, 1, 1], [], []>} : vector<16x16xf32>, vector<16x8xf32>, vector<16x8xf32> -> vector<16x8xf32>
    %79 = tpu.concatenate %50, %78 in 1 : vector<16x8xf32>, vector<16x8xf32> -> vector<16x16xf32>
    %80 = vector.broadcast %8 : vector<1x16xf32> to vector<16x16xf32>
    %81 = arith.addf %79, %80 : vector<16x16xf32>
    %cst_41 = arith.constant dense<0.000000e+00> : vector<2x16xf32>
    %82 = tpu.matmul %3, %81, %cst_41 {dimension_numbers = #tpu.dot_dimension_numbers<[1], [0], [0], [1], [0, 0, 1, 1], [], []>} : vector<2x16xf32>, vector<16x16xf32>, vector<2x16xf32> -> vector<2x16xf32>
    %cst_42 = arith.constant dense<0.000000e+00> : vector<16x16xf32>
    %83 = tpu.matmul %4, %82, %cst_42 {dimension_numbers = #tpu.dot_dimension_numbers<[1], [0], [0], [1], [0, 0, 1, 1], [], []>} : vector<16x2xf32>, vector<2x16xf32>, vector<16x16xf32> -> vector<16x16xf32>
    %84 = vector.broadcast %11 : vector<1x16xf32> to vector<16x16xf32>
    %85 = arith.mulf %83, %84 : vector<16x16xf32>
    %86 = arith.subf %81, %85 : vector<16x16xf32>
    %87 = arith.mulf %86, %86 : vector<16x16xf32>
    %cst_43 = arith.constant dense<0.000000e+00> : vector<2x16xf32>
    %88 = tpu.matmul %3, %87, %cst_43 {dimension_numbers = #tpu.dot_dimension_numbers<[1], [0], [0], [1], [0, 0, 1, 1], [], []>} : vector<2x16xf32>, vector<16x16xf32>, vector<2x16xf32> -> vector<2x16xf32>
    %cst_44 = arith.constant dense<0.000000e+00> : vector<16x16xf32>
    %89 = tpu.matmul %4, %88, %cst_44 {dimension_numbers = #tpu.dot_dimension_numbers<[1], [0], [0], [1], [0, 0, 1, 1], [], []>} : vector<16x2xf32>, vector<2x16xf32>, vector<16x16xf32> -> vector<16x16xf32>
    %90 = vector.broadcast %9 : vector<1x16xf32> to vector<16x16xf32>
    %91 = arith.mulf %90, %86 : vector<16x16xf32>
    %cst_45 = arith.constant 9.99999974E-6 : f32
    %92 = vector.broadcast %cst_45 : f32 to vector<16x16xf32>
    %93 = arith.addf %89, %92 : vector<16x16xf32>
    %94 = math.rsqrt %93 : vector<16x16xf32>
    %95 = arith.mulf %91, %94 : vector<16x16xf32>
    %96 = vector.broadcast %10 : vector<1x16xf32> to vector<16x16xf32>
    %97 = arith.addf %95, %96 : vector<16x16xf32>
    %cst_46 = arith.constant 0.000000e+00 : f32
    %98 = vector.broadcast %cst_46 : f32 to vector<16x16xf32>
    %99 = arith.maximumf %97, %98 : vector<16x16xf32>
    %c0_47 = arith.constant 0 : index
    %c0_48 = arith.constant 0 : index
    %100 = vector.load %arg9[%c0_47, %c0_48] : memref<16x16xf32, #tpu.memory_space<vmem>>, vector<16x16xf32>
    %cst_49 = arith.constant dense<0.000000e+00> : vector<16x16xf32>
    %101 = tpu.matmul %99, %100, %cst_49 {dimension_numbers = #tpu.dot_dimension_numbers<[1], [0], [0], [1], [0, 0, 1, 1], [], []>} : vector<16x16xf32>, vector<16x16xf32>, vector<16x16xf32> -> vector<16x16xf32>
    %102 = vector.broadcast %13 : vector<1x16xf32> to vector<16x16xf32>
    %103 = arith.addf %101, %102 : vector<16x16xf32>
    %cst_50 = arith.constant 0.000000e+00 : f32
    %104 = vector.broadcast %cst_50 : f32 to vector<16x16xf32>
    %105 = arith.maximumf %103, %104 : vector<16x16xf32>
    %c0_51 = arith.constant 0 : index
    %c0_52 = arith.constant 0 : index
    %106 = vector.load %arg10[%c0_51, %c0_52] : memref<16x1xf32, #tpu.memory_space<vmem>>, vector<16x1xf32>
    %cst_53 = arith.constant dense<0.000000e+00> : vector<16x1xf32>
    %107 = tpu.matmul %105, %106, %cst_53 {dimension_numbers = #tpu.dot_dimension_numbers<[1], [0], [0], [1], [0, 0, 1, 1], [], []>} : vector<16x16xf32>, vector<16x1xf32>, vector<16x1xf32> -> vector<16x1xf32>
    %108 = vector.broadcast %14 : vector<1x1xf32> to vector<16x1xf32>
    %109 = arith.addf %107, %108 : vector<16x1xf32>
    %110 = arith.negf %109 : vector<16x1xf32>
    %111 = math.exp %110 : vector<16x1xf32>
    %cst_54 = arith.constant 1.000000e+00 : f32
    %112 = vector.broadcast %cst_54 : f32 to vector<16x1xf32>
    %113 = arith.addf %112, %111 : vector<16x1xf32>
    %114 = arith.divf %112, %113 : vector<16x1xf32>
    %115 = tpu.transpose %114, [1, 0] : vector<16x1xf32> -> vector<1x16xf32>
    %116 = vector.shape_cast %115 : vector<1x16xf32> to vector<1x16xf32>
    %117 = vector.broadcast %116 : vector<1x16xf32> to vector<2x16xf32>
    %cst_55 = arith.constant 0.000000e+00 : f32
    %118 = vector.broadcast %cst_55 : f32 to vector<2x16xf32>
    %119 = arith.cmpf ogt, %3, %118 : vector<2x16xf32>
    %cst_56 = arith.constant -1.000000e+30 : f32
    %120 = vector.broadcast %cst_56 : f32 to vector<2x16xf32>
    %121 = arith.select %119, %117, %120 : vector<2x16xi1>, vector<2x16xf32>
    %cst_57 = arith.constant dense<0xFF800000> : vector<2xf32>
    %122 = vector.multi_reduction <maximumf>, %121, %cst_57 [1] : vector<2x16xf32> to vector<2xf32>
    %123 = vector.shape_cast %122 : vector<2xf32> to vector<2x1xf32>
    %124 = vector.broadcast %123 : vector<2x1xf32> to vector<2x16xf32>
    %125 = arith.subf %121, %124 : vector<2x16xf32>
    %126 = math.exp %125 : vector<2x16xf32>
    %cst_58 = arith.constant dense<0.000000e+00> : vector<2xf32>
    %127 = vector.multi_reduction <add>, %126, %cst_58 [1] : vector<2x16xf32> to vector<2xf32>
    %128 = vector.shape_cast %127 : vector<2xf32> to vector<2x1xf32>
    %cst_59 = arith.constant 1.000000e-30 : f32
    %129 = vector.broadcast %cst_59 : f32 to vector<2x1xf32>
    %130 = arith.maximumf %128, %129 : vector<2x1xf32>
    %131 = vector.broadcast %130 : vector<2x1xf32> to vector<2x16xf32>
    %132 = arith.divf %126, %131 : vector<2x16xf32>
    %cst_60 = arith.constant dense<0.000000e+00> : vector<2x16xf32>
    %133 = tpu.matmul %132, %99, %cst_60 {dimension_numbers = #tpu.dot_dimension_numbers<[1], [0], [0], [1], [0, 0, 1, 1], [], []>} : vector<2x16xf32>, vector<16x16xf32>, vector<2x16xf32> -> vector<2x16xf32>
    %c0_61 = arith.constant 0 : index
    %c0_62 = arith.constant 0 : index
    %134 = vector.load %arg11[%c0_61, %c0_62] : memref<16x16xf32, #tpu.memory_space<vmem>>, vector<16x16xf32>
    %cst_63 = arith.constant dense<0.000000e+00> : vector<2x16xf32>
    %135 = tpu.matmul %133, %134, %cst_63 {dimension_numbers = #tpu.dot_dimension_numbers<[1], [0], [0], [1], [0, 0, 1, 1], [], []>} : vector<2x16xf32>, vector<16x16xf32>, vector<2x16xf32> -> vector<2x16xf32>
    %136 = vector.broadcast %15 : vector<1x16xf32> to vector<2x16xf32>
    %137 = arith.addf %135, %136 : vector<2x16xf32>
    %cst_64 = arith.constant 0.000000e+00 : f32
    %138 = vector.broadcast %cst_64 : f32 to vector<2x16xf32>
    %139 = arith.maximumf %137, %138 : vector<2x16xf32>
    %c0_65 = arith.constant 0 : index
    %c0_66 = arith.constant 0 : index
    %140 = vector.load %arg12[%c0_65, %c0_66] : memref<16x1xf32, #tpu.memory_space<vmem>>, vector<16x1xf32>
    %cst_67 = arith.constant dense<0.000000e+00> : vector<2x1xf32>
    %141 = tpu.matmul %139, %140, %cst_67 {dimension_numbers = #tpu.dot_dimension_numbers<[1], [0], [0], [1], [0, 0, 1, 1], [], []>} : vector<2x16xf32>, vector<16x1xf32>, vector<2x1xf32> -> vector<2x1xf32>
    %142 = vector.broadcast %16 : vector<1x1xf32> to vector<2x1xf32>
    %143 = arith.addf %141, %142 : vector<2x1xf32>
    %144 = arith.negf %143 : vector<2x1xf32>
    %145 = math.exp %144 : vector<2x1xf32>
    %cst_68 = arith.constant 1.000000e+00 : f32
    %146 = vector.broadcast %cst_68 : f32 to vector<2x1xf32>
    %147 = arith.addf %146, %145 : vector<2x1xf32>
    %148 = arith.divf %146, %147 : vector<2x1xf32>
    %c0_69 = arith.constant 0 : index
    %c0_70 = arith.constant 0 : index
    %149 = vector.load %arg14[%c0_69, %c0_70] : memref<2x1xf32, #tpu.memory_space<vmem>>, vector<2x1xf32>
    tpu.vector_store %arg14[%c0_69, %c0_70], %148 {strides = array<i32>} : memref<2x1xf32, #tpu.memory_space<vmem>>, vector<2x1xf32>,
    return
  }
}

</mosaic_0001>

<bundles_post_ra>
// kernel: single_task_forward.1
= control target key start
LH: loop header
LB: loop body
LE: loop exit
PB: predicated region body
PF: predicated region fallthrough
CT: control target
= control target key end

     0   :  { %vm62_vm0 = vcmask 64512   ;;  %v1648_v3 = vmov 0   ;;  %v1649_v6 = vmov 0.0   ;;  %vm1650_vm1 = vmmov 0   ;;  %s1654_s22 = smov 8   ;;  %s1655_s30 = smov 112   ;;  %s1914_s6 = inlined_call_operand.vmem [shape: f32[8,2], index: 6, kind: input, shape index: {}]   ;;  %s1915_s0 = inlined_call_operand.vmem [shape: f32[16,8], index: 0, kind: input, shape index: {}]   ;;  %s1916_s5 = inlined_call_operand.vmem [shape: f32[8,16], index: 5, kind: input, shape index: {}]   ;;  %s1917_s1 = inlined_call_operand.vmem [shape: f32[8,16], index: 1, kind: input, shape index: {}]   ;;  %s1918_s7 = inlined_call_operand.vmem [shape: f32[2,8], index: 7, kind: input, shape index: {}]   ;;  %s1919_s2 = inlined_call_operand.vmem [shape: f32[16,16], index: 2, kind: input, shape index: {}]   ;;  %s1920_s15 = inlined_call_operand.vmem [shape: f32[2,16,16], index: 15, kind: output, shape index: {1}]   ;;  %s1921_s8 = inlined_call_operand.vmem [shape: f32[4,16], index: 8, kind: input, shape index: {}]   ;;  %s1922_s3 = inlined_call_operand.vmem [shape: f32[2,16], index: 3, kind: input, shape index: {}]   ;;  %s1923_s4 = inlined_call_operand.vmem [shape: f32[16,2], index: 4, kind: input, shape index: {}]   ;;  %s1924_s9 = inlined_call_operand.vmem [shape: f32[16,16], index: 9, kind: input, shape index: {}]   ;;  %s1925_s10 = inlined_call_operand.vmem [shape: f32[16,1], index: 10, kind: input, shape index: {}]   ;;  %s1926_s13 = inlined_call_operand.vmem [shape: f32[1,34], index: 13, kind: input, shape index: {}]   ;;  %s1927_s11 = inlined_call_operand.vmem [shape: f32[16,16], index: 11, kind: input, shape index: {}]   ;;  %s1928_s12 = inlined_call_operand.vmem [shape: f32[16,1], index: 12, kind: input, shape index: {}]   ;;  %s1929_s14 = inlined_call_operand.vmem [shape: f32[2,1], index: 14, kind: output, shape index: {0}]  }
   0x1   :  { %v144_v0 = vld [vmem:[%s1914_s6] sm:$0xff]  ;;  %v50_v2 = vld [vmem:[%s1915_s0 + $0x8] sm:$0xff]  ;;  %1606 = vset.pattern.permute.xlu1 %v1648_v3  ;;  %v1651_v8 = vmov 1   ;;  %v304_v17 = vlaneseq  ;;  %vm318_vm4 = vcmask 130048   ;;  %vm653_vm9 = vcmask 15360   ;;  %s1656_s18 = smov 111  }
   0x2   :  { %v49_v1 = vld [vmem:[%s1915_s0] sm:$0xff]  ;;  %1481 = vmatprep.subr.mxu1 %v144_v0  ;;  %1605 = vset.pattern.permute.xlu0 %v1651_v8  ;;  %v53_v35 = vld [vmem:[%s1919_s2 + $0x8] sm:$0xff]  ;;  %vm660_vm10 = vcmask 1041408   ;;  %vm1142_vm12 = vcmask 123904   ;;  %vm1391_vm13 = vcmask 1024  }
   0x3   :  { %1483 = vmatprep.mubr.msk.f32.mxu1 %vm62_vm0, %v49_v1  ;;  %v61_v4 = vld [vmem:[%s1916_s5] sm:$0xff]  ;;  %1482 = vmatpush3.msra.mxu1 %v144_v0  ;;  %v1772_v18 = vshrl.u32 %v304_v17, 7  ;;  %vm58_vm8 = vcmp.gt.f32.partialorder %v53_v35, 0.0 }
   0x4   :  { %1476 = vmatprep.subr.mxu0 %v61_v4  ;;  %1484 = vmatmul.mubr.msk.f32.vlgmr.msra.gmra.mrb[0].mxu1 %vm62_vm0, %v50_v2  ;;  %v51_v5 = vld [vmem:[%s1917_s1] sm:$0xff] }
   0x5   :  { %1477 = vmatpush3.msra.mxu0 %v61_v4  ;;  %1478 = vmatprep.mubr.msk.f32.mxu0 %vm62_vm0, %v49_v1  ;;  %v220_v7 = vld [vmem:[%s1918_s7] sm:$0x3]  ;;  %v1775_v19 = vsub.s32 0, %v1772_v18  ;;  %v436_v20 = vsub.s32 1, %v1772_v18 }
   0x6   :  { %1486 = vmatprep.subr.mxu0 %v1649_v6  ;;  %1479 = vmatmul.mubr.msk.f32.vlgmr.msra.gmra.mrb[0].mxu0 %vm62_vm0, %v50_v2  ;;  %v52_v25 = vld [vmem:[%s1919_s2] sm:$0xff]  ;;  %s1652_s2 = smov 120  }
   0x7   :  { %1487 = vmatpush3.msra.mxu0 %v51_v5  ;;  %1488 = vmatprep.mubr.msk.f32.mxu0 %vm1650_vm1, %v1649_v6  ;;  %vm57_vm2 = vcmp.gt.f32.partialorder %v52_v25, 0.0 }
   0xa   :  { %1489 = vmatmul.mubr.msk.f32.vlgmr.msra.gmra.mrb[2].mxu0 %vm62_vm0, %v220_v7 }
  0xd7   :  { %v1485_v9 = vpop.f32.mrb[0].mxu1 }
  0xd8   :  { %301 = vperm.xlu1 %1606, %v1485_v9   ;;  %v211_v10 = vpop.f32.mrb[1].mxu1 }
  0xd9   :  { %427 = vperm.xlu0 %1605, %v211_v10   ;;  %v1764_v11 = vpop.f32.mrb[0].mxu0 }
  0xda   :  { %v1766_v12 = vpop.f32.mrb[1].mxu0 }
  0xdb   :  { %v1607_v13 = vpack.i.bf16 %v1764_v11, %v1766_v12  ;;  %v1564_v14 = vpack.c.bf16 %v1764_v11, %v1766_v12 }
  0xdc   :  { %296 = vperm.xlu1 %1606, %v211_v10  }
  0xdd   :  { %431 = vperm.xlu0 %1605, %v1485_v9   ;;  %v290_v15 = vpop.f32.mrb[2].mxu0  ;;  %1565 = vmatprep.subr.bf16.mxu1 %v1564_v14 }
  0xde   :  { %1567 = vmatpush3.bf16.msra.mxu1 %v1564_v14  ;;  %v1490_v16 = vpop.f32.mrb[3].mxu0  ;;  %v307_v21 = vrot.slane %v290_v15, %v1775_v19  ;;  %v437_v22 = vrot.slane %v290_v15, %v436_v20 }
 0x157   :  { %v302_v23 = vpop.permute.xlu1 %301 }
 0x158   :  { %v428_v24 = vpop.permute.xlu0 %427  ;;  %v309_v26 = vadd.f32 %v307_v21, %v302_v23 }
 0x159   :  { %v438_v27 = vadd.f32 %v437_v22, %v428_v24 }
 0x15a   :  { %v313_v32 = vmul.f32 0.2, %v309_v26  ;;  %vm311_vm6 = vcmp.gt.f32.partialorder %v309_v26, 0.0 }
 0x15b   :  { %v442_v28 = vmul.f32 0.2, %v438_v27  ;;  %v297_v29 = vpop.permute.xlu1 %296  ;;  %vm440_vm3 = vcmp.gt.f32.partialorder %v438_v27, 0.0 }
 0x15c   :  { %v308_v30 = vadd.f32 %v307_v21, %v297_v29  ;;  %v432_v31 = vpop.permute.xlu0 %431  ;;  %v315_v43 = vsel %vm311_vm6, %v309_v26, %v313_v32  ;;  %v1653_v29 = vmov 0.0|0.0  }
 0x15d   :  { %v439_v33 = vadd.f32 %v437_v22, %v432_v31  ;;  %v444_v34 = vsel %vm440_vm3, %v438_v27, %v442_v28  ;;  %v317_v47 = vsel %vm58_vm8, %v315_v43, -1e+30  ;;  %1572 = vmatprep.subr.bf16.mxu1 %v1653_v29  ;;  %v1832_v43 = vld [vmem:[%s1922_s3] sm:$0x3] }
 0x15e   :  { %v312_v36 = vmul.f32 0.2, %v308_v30  ;;  %v446_v37 = vsel %vm57_vm2, %v444_v34, -1e+30  ;;  %vm310_vm5 = vcmp.gt.f32.partialorder %v308_v30, 0.0  ;;  %v322_v48 = vsel %vm318_vm4, %v317_v47, -inf }
 0x15f   :  { %v443_v38 = vmul.f32 0.2, %v439_v33  ;;  %v448_v39 = vsel %vm318_vm4, %v446_v37, -inf  ;;  %vm441_vm7 = vcmp.gt.f32.partialorder %v439_v33, 0.0  ;;  %v59_v34 = vld [vmem:[%s1921_s8] sm:$0xf] }
 0x160   :  { %449 = vmax.xlane.f32.xlu0 %v448_v39  ;;  %v314_v40 = vsel %vm310_vm5, %v308_v30, %v312_v36  ;;  %v577_v35 = vrot.slane %v59_v34, %v1775_v19  ;;  %vm1140_vm11 = vcmp.gt.f32.partialorder %v1832_v43, 0.0 }
 0x161   :  { %v445_v41 = vsel %vm441_vm7, %v439_v33, %v443_v38  ;;  %v316_v42 = vsel %vm57_vm2, %v314_v40, -1e+30 }
 0x162   :  { %v447_v44 = vsel %vm58_vm8, %v445_v41, -1e+30  ;;  %v319_v45 = vsel %vm318_vm4, %v316_v42, -inf }
 0x163   :  { %v451_v46 = vsel %vm318_vm4, %v447_v44, -inf }
 0x164   :  { %452 = vmax.xlane.f32.xlu1 %v451_v46  ;;  %320 = vmax.xlane.f32.xlu0 %v319_v45  ;;  %v56_v46 = vld [vmem:[%s1923_s4 + $0x8] sm:$0xff] }
 0x168   :  { %323 = vmax.xlane.f32.xlu0 %v322_v48  ;;  %v741_v48 = vsub.s32 3, %v1772_v18 }
 0x1ed   :  { %v450_v49 = vpop.xlane.xlu0 %449 }
 0x1ee   :  { %v454_v50 = vsub.f32 %v446_v37, %v450_v49  ;;  %v742_v49 = vrot.slane %v59_v34, %v741_v48 }
 0x1f0   :  { %v456_v51 = vmul.f32 1.442695, %v454_v50 }
 0x1f1   :  { %v453_v52 = vpop.xlane.xlu1 %452  ;;  %v321_v53 = vpop.xlane.xlu0 %320 }
 0x1f2   :  { %1612 = vpow2.f32 %v456_v51  ;;  %v455_v54 = vsub.f32 %v447_v44, %v453_v52  ;;  %v325_v55 = vsub.f32 %v316_v42, %v321_v53  ;;  %v55_v44 = vld [vmem:[%s1923_s4] sm:$0xff] }
 0x1f4   :  { %v458_v56 = vmul.f32 1.442695, %v455_v54  ;;  %v327_v57 = vmul.f32 1.442695, %v325_v55 }
 0x1f5   :  { %v324_v58 = vpop.xlane.xlu0 %323 }
 0x1f6   :  { %1614 = vpow2.f32 %v458_v56  ;;  %v326_v59 = vsub.f32 %v317_v47, %v324_v58 }
 0x1f7   :  { %1616 = vpow2.f32 %v327_v57 }
 0x1f8   :  { %v329_v60 = vmul.f32 1.442695, %v326_v59 }
 0x1fa   :  { %1618 = vpow2.f32 %v329_v60 }
 0x1fc   :  { %v1613_v61 = vpop.eup %1612 }
 0x1fd   :  { %v460_v62 = vsel %vm318_vm4, %v1613_v61, 0.0 }
 0x1fe   :  { %461 = vadd.xlane.f32.xlu1 %v460_v62  ;;  %v916_v62 = vld [vmem:[%s1924_s9 + $0x8] sm:$0xff] }
 0x200   :  { %v1615_v63 = vpop.eup %1614 }
 0x201   :  { %v463_v0 = vsel %vm318_vm4, %v1615_v63, 0.0  ;;  %v1617_v1 = vpop.eup %1616 }
 0x202   :  { %464 = vadd.xlane.f32.xlu0 %v463_v0  ;;  %v331_v2 = vsel %vm318_vm4, %v1617_v1, 0.0 }
 0x204   :  { %v1619_v3 = vpop.eup %1618 }
 0x205   :  { %v334_v4 = vsel %vm318_vm4, %v1619_v3, 0.0 }
 0x206   :  { %332 = vadd.xlane.f32.xlu0 %v331_v2 }
 0x20a   :  { %335 = vadd.xlane.f32.xlu0 %v334_v4  ;;  %v822_v4 = vrot.slane %v59_v34, %v436_v20  ;;  %v1007_v20 = vld [vmem:[%s1925_s10 + $0x8] sm:$0xff] }
 0x20f   :  { %1608 = vrot.lane.b32.xlu1 %v1607_v13, %s1652_s2 }
 0x28b   :  { %v462_v5 = vpop.xlane.xlu1 %461 }
 0x28c   :  { %v466_v7 = vmax.f32 %v462_v5, 1e-30  ;;  %v909_v5 = vsub.s32 2, %v1772_v18  ;;  %v1006_v18 = vld [vmem:[%s1925_s10] sm:$0xff] }
 0x28e   :  { %1620 = vrcp.f32 %v466_v7 }
 0x28f   :  { %v1609_v8 = vpop.permute.xlu1 %1608  ;;  %v465_v9 = vpop.xlane.xlu0 %464 }
 0x290   :  { %v1611_v10 = vunpack.i.h.bf16 %v1609_v8  ;;  %v1610_v14 = vunpack.i.l.bf16 %v1609_v8  ;;  %v467_v15 = vmax.f32 %v465_v9, 1e-30  ;;  %v910_v8 = vrot.slane %v59_v34, %v909_v5 }
 0x292   :  { %v1568_v16 = vpack.c.bf16 %v1611_v10, %v1610_v14  ;;  %1622 = vrcp.f32 %v467_v15 }
 0x293   :  { %v333_v17 = vpop.xlane.xlu0 %332 }
 0x294   :  { %v337_v21 = vmax.f32 %v333_v17, 1e-30  ;;  %1569 = vmatprep.subr.bf16.mxu0 %v1568_v16 }
 0x295   :  { %1571 = vmatpush3.bf16.msra.mxu0 %v1568_v16 }
 0x296   :  { %1624 = vrcp.f32 %v337_v21 }
 0x297   :  { %v336_v22 = vpop.xlane.xlu0 %335 }
 0x298   :  { %v1621_v23 = vpop.eup %1620  ;;  %v338_v24 = vmax.f32 %v336_v22, 1e-30 }
 0x299   :  { %v469_v11 = vmul.f32 %v1621_v23, %v1613_v61  ;;  %v915_v61 = vld [vmem:[%s1924_s9] sm:$0xff] }
 0x29a   :  { %1626 = vrcp.f32 %v338_v24 }
 0x29b   :  { %1408 = vst.msk [vmem:[%s1920_s15 + $0x10] sm:$0xff] %vm318_vm4, %v469_v11  ;;  %1502 = vmatprep.mubr.msk.f32.mxu0 %vm318_vm4, %v469_v11  ;;  %v1582_v11 = vpack.c.bf16 %v1007_v20, %v1006_v18 }
 0x29c   :  { %v1623_v12 = vpop.eup %1622 }
 0x29d   :  { %v471_v13 = vmul.f32 %v1623_v12, %v1615_v63  ;;  %v1578_v63 = vpack.c.bf16 %v916_v62, %v915_v61  ;;  %v1881_v12 = vld [vmem:[%s1926_s13] ss:$0 sm:$0xff]  ;;  %v1308_v61 = vld [vmem:[%s1928_s12 + $0x8] sm:$0xff] }
 0x29f   :  { %1409 = vst.msk [vmem:[%s1920_s15 + $0x18] sm:$0xff] %vm318_vm4, %v471_v13  ;;  %1503 = vmatmul.mubr.msk.f32.vlgmr.msra.gmra.mrb[4].mxu0 %vm318_vm4, %v471_v13 }
 0x2a0   :  { %v1625_v25 = vpop.eup %1624  ;;  %1514 = vmatprep.mubr.msk.f32.mxu0 %vm653_vm9, %v55_v44 }
 0x2a1   :  { %v340_v26 = vmul.f32 %v1625_v25, %v1617_v1 }
 0x2a3   :  { %343 = vst.msk [vmem:[%s1920_s15] sm:$0xff] %vm318_vm4, %v340_v26  ;;  %1495 = vmatprep.mubr.msk.f32.mxu1 %vm318_vm4, %v340_v26 }
 0x2a4   :  { %v1627_v27 = vpop.eup %1626 }
 0x2a5   :  { %v342_v28 = vmul.f32 %v1627_v27, %v1619_v3 }
 0x2a7   :  { %344 = vst.msk [vmem:[%s1920_s15 + $0x8] sm:$0xff] %vm318_vm4, %v342_v28  ;;  %1496 = vmatmul.mubr.msk.f32.vlgmr.msra.gmra.mrb[2].mxu1 %vm318_vm4, %v342_v28 }
 0x2a8   :  { %1509 = vmatprep.mubr.msk.f32.mxu1 %vm1650_vm1, %v1649_v6 }
 0x372   :  { %v1504_v30 = vpop.f32.mrb[4].mxu0 }
 0x373   :  { %568 = vrot.lane.b32.xlu1 %v1504_v30, %s1654_s22  ;;  %v555_v31 = vpop.f32.mrb[5].mxu0 }
 0x374   :  { %566 = vrot.lane.b32.xlu0 %v555_v31, %s1654_s22  ;;  %s1657_s22 = smov 95  }
 0x377   :  { %1008 = vrot.lane.b32.xlu1 %v1881_v12, %s1655_s30 }
 0x37a   :  { %v1497_v32 = vpop.f32.mrb[2].mxu1 }
 0x37b   :  { %v417_v33 = vpop.f32.mrb[3].mxu1 }
 0x3e5   :  { %v569_v36 = vpop.permute.xlu1 %568 }
 0x3e6   :  { %v573_v37 = vsel %vm62_vm0, %v1497_v32, %v569_v36  ;;  %v567_v38 = vpop.permute.xlu0 %566 }
 0x3e7   :  { %v579_v39 = vadd.f32 %v577_v35, %v573_v37  ;;  %v572_v40 = vsel %vm62_vm0, %v417_v33, %v567_v38 }
 0x3e8   :  { %v578_v41 = vadd.f32 %v577_v35, %v572_v40 }
 0x3ea   :  { %v1573_v42 = vpack.c.bf16 %v579_v39, %v578_v41 }
 0x3ec   :  { %1574 = vmatpush3.bf16.msra.mxu1 %v1573_v42 }
 0x3ed   :  { %1575 = vmatprep.subr.bf16.mxu1 %v1653_v29 }
 0x3ef   :  { %1510 = vmatmul.mubr.msk.f32.vlgmr.msra.gmra.mrb[4].mxu1 %vm318_vm4, %v1832_v43 }
 0x3f0   :  { %1521 = vmatprep.mubr.msk.f32.mxu1 %vm1650_vm1, %v1649_v6 }
 0x4c2   :  { %v649_v45 = vpop.f32.mrb[4].mxu1 }
 0x4c3   :  { %v1511_v47 = vpop.f32.mrb[5].mxu1  ;;  %1512 = vmatprep.subr.msk.mxu0 %vm660_vm10, %v649_v45 }
 0x4c4   :  { %1513 = vmatpush3.msk.msra.mxu0 %vm660_vm10, %v649_v45 }
 0x4c5   :  { %1515 = vmatmul.mubr.msk.f32.vlgmr.msra.gmra.mrb[6].mxu0 %vm653_vm9, %v56_v46 }
 0x4c6   :  { %1526 = vmatprep.mubr.msk.f32.mxu0 %vm653_vm9, %v55_v44 }
 0x598   :  { %v1516_v50 = vpop.f32.mrb[6].mxu0 }
 0x599   :  { %v744_v51 = vmul.f32 %v1516_v50, %v742_v49  ;;  %v730_v52 = vpop.f32.mrb[7].mxu0 }
 0x59a   :  { %v743_v53 = vmul.f32 %v742_v49, %v730_v52 }
 0x59b   :  { %v746_v54 = vsub.f32 %v579_v39, %v744_v51 }
 0x59c   :  { %v745_v55 = vsub.f32 %v578_v41, %v743_v53  ;;  %v1228_v53 = vld [vmem:[%s1927_s11] sm:$0xff] }
 0x59d   :  { %v748_v56 = vmul.f32 %v746_v54, %v746_v54  ;;  %v824_v7 = vmul.f32 %v822_v4, %v746_v54 }
 0x59e   :  { %v747_v57 = vmul.f32 %v745_v55, %v745_v55  ;;  %v823_v10 = vmul.f32 %v822_v4, %v745_v55 }
 0x5a0   :  { %v1576_v58 = vpack.c.bf16 %v748_v56, %v747_v57 }
 0x5a2   :  { %1577 = vmatpush3.bf16.msra.mxu1 %v1576_v58 }
 0x5a3   :  { %1579 = vmatprep.subr.bf16.mxu1 %v1578_v63 }
 0x5a5   :  { %1522 = vmatmul.mubr.msk.f32.vlgmr.msra.gmra.mrb[6].mxu1 %vm318_vm4, %v1832_v43  ;;  %v1229_v43 = vld [vmem:[%s1927_s11 + $0x8] sm:$0xff] }
 0x5a6   :  { %1581 = vmatpush3.bf16.msra.mxu1 %v1578_v63 }
 0x5a7   :  { %1586 = vmatprep.subr.bf16.mxu1 %v1653_v29 }
 0x678   :  { %v815_v59 = vpop.f32.mrb[6].mxu1 }
 0x679   :  { %v1523_v60 = vpop.f32.mrb[7].mxu1  ;;  %1524 = vmatprep.subr.msk.mxu0 %vm660_vm10, %v815_v59 }
 0x67a   :  { %1525 = vmatpush3.msk.msra.mxu0 %vm660_vm10, %v815_v59  ;;  %v1307_v60 = vld [vmem:[%s1928_s12] sm:$0xff] }
 0x67b   :  { %1527 = vmatmul.mubr.msk.f32.vlgmr.msra.gmra.mrb[8].mxu0 %vm653_vm9, %v56_v46  ;;  %1583 = vmatprep.subr.bf16.mxu0 %v1582_v11  ;;  %v1593_v62 = vpack.c.bf16 %v1308_v61, %v1307_v60 }
 0x67c   :  { %1585 = vmatpush3.bf16.msra.mxu0 %v1582_v11 }
 0x67d   :  { %1589 = vmatprep.subr.bf16.mxu0 %v1653_v29 }
 0x74e   :  { %v1528_v0 = vpop.f32.mrb[8].mxu0 }
 0x74f   :  { %v900_v1 = vadd.f32 1e-05, %v1528_v0  ;;  %v894_v2 = vpop.f32.mrb[9].mxu0 }
 0x750   :  { %v895_v3 = vadd.f32 1e-05, %v894_v2 }
 0x751   :  { %1628 = vrsqrt.f32 %v900_v1 }
 0x752   :  { %1630 = vrsqrt.f32 %v895_v3 }
 0x75b   :  { %v1629_v9 = vpop.eup %1628 }
 0x75c   :  { %v1631_v14 = vpop.eup %1630  ;;  %v906_v15 = vmul.f32 %v1629_v9, %v824_v7 }
 0x75d   :  { %v905_v16 = vmul.f32 %v1631_v14, %v823_v10 }
 0x75e   :  { %v912_v17 = vadd.f32 %v910_v8, %v906_v15 }
 0x75f   :  { %v911_v21 = vadd.f32 %v910_v8, %v905_v16 }
 0x760   :  { %v914_v22 = vmax.f32 %v912_v17, 0.0 }
 0x761   :  { %v913_v23 = vmax.f32 %v911_v21, 0.0 }
 0x763   :  { %1533 = vmatprep.mubr.msk.f32.mxu1 %vm318_vm4, %v913_v23  ;;  %v1587_v24 = vpack.c.bf16 %v914_v22, %v913_v23 }
 0x764   :  { %1534 = vmatmul.mubr.msk.f32.vlgmr.msra.gmra.mrb[8].mxu1 %vm318_vm4, %v914_v22 }
 0x765   :  { %1588 = vmatpush3.bf16.msra.mxu1 %v1587_v24  ;;  %1547 = vmatprep.mubr.msk.f32.mxu1 %vm1650_vm1, %v1649_v6 }
 0x766   :  { %1592 = vmatprep.subr.bf16.mxu1 %v1653_v29  ;;  %v1009_v29 = vpop.permute.xlu1 %1008 }
 0x837   :  { %v1535_v13 = vpop.f32.mrb[8].mxu1 }
 0x838   :  { %v1001_v25 = vadd.f32 %v1535_v13, %v1881_v12  ;;  %v995_v26 = vpop.f32.mrb[9].mxu1 }
 0x839   :  { %v996_v27 = vadd.f32 %v1881_v12, %v995_v26 }
 0x83a   :  { %v1005_v30 = vmax.f32 %v1001_v25, 0.0 }
 0x83b   :  { %v1004_v28 = vmax.f32 %v996_v27, 0.0 }
 0x83d   :  { %1540 = vmatprep.mubr.msk.f32.mxu0 %vm318_vm4, %v1004_v28 }
 0x83e   :  { %1541 = vmatmul.mubr.msk.f32.vlgmr.msra.gmra.mrb[10].mxu0 %vm318_vm4, %v1005_v30 }
 0x83f   :  { %1554 = vmatprep.mubr.msk.f32.mxu0 %vm1650_vm1, %v1649_v6 }
 0x911   :  { %v1542_v31 = vpop.f32.mrb[10].mxu0 }
 0x912   :  { %v1089_v32 = vadd.f32 %v1542_v31, %v1009_v29  ;;  %v1083_v33 = vpop.f32.mrb[11].mxu0 }
 0x913   :  { %v1084_v34 = vadd.f32 %v1083_v33, %v1009_v29 }
 0x914   :  { %v1426_v35 = vmul.f32 -1.442695, %v1089_v32 }
 0x915   :  { %v1425_v36 = vmul.f32 -1.442695, %v1084_v34 }
 0x916   :  { %1632 = vpow2.f32 %v1426_v35 }
 0x917   :  { %1634 = vpow2.f32 %v1425_v36 }
 0x920   :  { %v1633_v37 = vpop.eup %1632 }
 0x921   :  { %v1635_v38 = vpop.eup %1634  ;;  %v1099_v40 = vadd.f32 1.0, %v1633_v37 }
 0x922   :  { %v1098_v39 = vadd.f32 1.0, %v1635_v38 }
 0x924   :  { %1636 = vrcp.f32 %v1098_v39 }
 0x925   :  { %1638 = vrcp.f32 %v1099_v40 }
 0x92e   :  { %v1637_v41 = vpop.eup %1636 }
 0x92f   :  { %1104 = vxpose.xlu1.b32.start [1/2] (short) (narrow) %v1637_v41, 8  ;;  %v1639_v42 = vpop.eup %1638 }
 0x933   :  { %1105 = vxpose.xlu1.b32.end [2/2] (short) (narrow) %v1639_v42, 8 }
 0x951   :  { %1309 = vrot.lane.b32.xlu1 %v1881_v12, %s1657_s22 }
 0x9af   :  { %v1120_v44 = vpop.trf.xlu1 }
 0x9b0   :  { %v1139_v45 = vrot.slane %v1120_v44, %v1775_v19  ;;  %v1590_v19 = vpack.c.bf16 %v1229_v43, %v1228_v53 }
 0x9b2   :  { %v1141_v46 = vsel %vm1140_vm11, %v1139_v45, -1e+30  ;;  %1591 = vmatpush3.bf16.msra.mxu0 %v1590_v19 }
 0x9b3   :  { %v1143_v47 = vsel %vm1142_vm12, %v1141_v46, -inf }
 0x9b4   :  { %1144 = vmax.xlane.f32.xlu0 %v1143_v47 }
 0x9c3   :  { %v1310_v3 = vpop.permute.xlu1 %1309 }
 0xa41   :  { %v1145_v48 = vpop.xlane.xlu0 %1144 }
 0xa42   :  { %v1146_v49 = vsub.f32 %v1141_v46, %v1145_v48 }
 0xa44   :  { %v1147_v50 = vmul.f32 1.442695, %v1146_v49 }
 0xa46   :  { %1640 = vpow2.f32 %v1147_v50 }
 0xa50   :  { %v1641_v51 = vpop.eup %1640 }
 0xa51   :  { %v1149_v52 = vsel %vm1142_vm12, %v1641_v51, 0.0 }
 0xa52   :  { %1150 = vadd.xlane.f32.xlu0 %v1149_v52 }
 0xa68   :  { %1230 = vrot.lane.b32.xlu0 %v1881_v12, %s1656_s18 }
 0xadf   :  { %v1151_v54 = vpop.xlane.xlu0 %1150 }
 0xae0   :  { %v1152_v55 = vmax.f32 %v1151_v54, 1e-30 }
 0xae2   :  { %1642 = vrcp.f32 %v1152_v55 }
 0xaec   :  { %v1643_v56 = vpop.eup %1642 }
 0xaed   :  { %v1154_v57 = vmul.f32 %v1643_v56, %v1641_v51 }
 0xaef   :  { %1548 = vmatmul.mubr.msk.f32.vlgmr.msra.gmra.mrb[10].mxu1 %vm318_vm4, %v1154_v57 }
 0xaf0   :  { %1561 = vmatprep.mubr.msk.f32.mxu1 %vm1650_vm1, %v1649_v6  ;;  %1594 = vmatpush3.bf16.msra.mxu1 %v1593_v62  ;;  %v1231_v6 = vpop.permute.xlu0 %1230 }
 0xbc2   :  { %v1224_v58 = vpop.f32.mrb[10].mxu1 }
 0xbc3   :  { %v1549_v59 = vpop.f32.mrb[11].mxu1  ;;  %1555 = vmatmul.mubr.msk.f32.vlgmr.msra.gmra.mrb[12].mxu0 %vm318_vm4, %v1224_v58 }
 0xc96   :  { %v1302_v63 = vpop.f32.mrb[12].mxu0 }
 0xc97   :  { %v1303_v0 = vadd.f32 %v1302_v63, %v1231_v6  ;;  %v1556_v1 = vpop.f32.mrb[13].mxu0 }
 0xc99   :  { %v1306_v2 = vmax.f32 %v1303_v0, 0.0 }
 0xc9b   :  { %1562 = vmatmul.mubr.msk.f32.vlgmr.msra.gmra.mrb[12].mxu1 %vm318_vm4, %v1306_v2 }
 0xd6e   :  { %v1381_v4 = vpop.f32.mrb[12].mxu1 }
 0xd6f   :  { %v1382_v5 = vadd.f32 %v1381_v4, %v1310_v3  ;;  %v1563_v7 = vpop.f32.mrb[13].mxu1 }
 0xd71   :  { %v1430_v8 = vmul.f32 -1.442695, %v1382_v5 }
 0xd73   :  { %1644 = vpow2.f32 %v1430_v8 }
 0xd7d   :  { %v1645_v9 = vpop.eup %1644 }
 0xd7e   :  { %v1388_v10 = vadd.f32 1.0, %v1645_v9 }
 0xd80   :  { %1646 = vrcp.f32 %v1388_v10 }
 0xd8a   :  { %v1647_v14 = vpop.eup %1646 }
 0xd8b   :  { %1392 = vst.msk [vmem:[%s1929_s14] sm:$0x3] %vm1391_vm13, %v1647_v14 }

</bundles_post_ra>
